<compile_context>
chip_gen: v5e
topology: v5e:2x2
jax: 0.10.0
libtpu: 0.0.40
codegen_flags: <defaults>
</compile_context>

<pallas_src>
import jax
import jax.numpy as jnp
import numpy as np
from jax.experimental import pallas as pl
from jax.experimental.pallas import tpu as pltpu


def coincident_kernel(x_ref, w1_ref, b1_ref, w2d_ref, b2d_ref, out_ref):
    """Single invocation; all detectors handled in one fused pass.

    x_ref   : (B, num_det*L)        bf16   flattened detector-concat inputs
    w1_ref  : (num_det*L, num_det*H) bf16  block-diagonal first-layer weights
    b1_ref  : (1, num_det*H)        f32
    w2d_ref : (num_det, 1, H)       f32    second-layer logit-difference weights
    b2d_ref : (num_det, 1, 1)       f32    second-layer logit-difference bias
    out_ref : (B, 2)                f32
    """
    num_det = w2d_ref.shape[0]
    H = w2d_ref.shape[-1]

    # One MXU matmul covers every detector's first layer (block-diagonal W1).
    h = jnp.dot(x_ref[...], w1_ref[...], preferred_element_type=jnp.float32)
    h = jnp.maximum(h + b1_ref[...], 0.0)            # (B, num_det*H), f32

    # Second layer per detector on VPU + XLU (too small for the MXU), with
    # softmax[:,1:] rewritten as sigmoid(z1 - z0).  Static unroll (num_det=2).
    prod = None
    for d in range(num_det):
        hd = h[:, d * H:(d + 1) * H]                  # (B, H) static lane slice
        zd = jnp.sum(hd * w2d_ref[d], axis=-1, keepdims=True) + b2d_ref[d]
        p1 = pl.reciprocal(1.0 + jnp.exp(-zd), approx=True)   # sigmoid on EUP
        prod = p1 if prod is None else prod * p1      # tensor_product

    out_ref[...] = jnp.concatenate(
        [1.0 - prod, prod], axis=1
    ).astype(out_ref.dtype)


def coincident_network(inputs, w1, b1, w2, b2):
    """inputs: (B, num_det, L); w1: (num_det, L, H); b1: (num_det, H);
    w2: (num_det, H, 2); b2: (num_det, 2).  Returns (B, 2) float32."""
    B, num_det, L = inputs.shape
    H = w1.shape[-1]

    # Contiguous reshape only (no transpose -> no extra HBM round trip).
    x_flat = inputs.reshape(B, num_det * L)

    # Block-diagonal first-layer weight: block (d,d) = w1[d].
    eye = jnp.eye(num_det, dtype=w1.dtype)
    w1_bd = (eye[:, None, :, None] * w1[:, :, None, :]).reshape(
        num_det * L, num_det * H)
    b1_cat = b1.reshape(1, num_det * H)

    # 2-class softmax then [:,1:]  ==  sigmoid(z1 - z0): only the logit
    # difference is needed from the second layer.
    w2_delta = (w2[:, :, 1] - w2[:, :, 0]).reshape(num_det, 1, H)
    b2_delta = (b2[:, 1] - b2[:, 0]).reshape(num_det, 1, 1)

    # bf16 feed for the MXU (f32 accumulate inside the kernel).
    x_bf16 = x_flat.astype(jnp.bfloat16)
    w1_bf16 = w1_bd.astype(jnp.bfloat16)

    vmem = pl.BlockSpec(memory_space=pltpu.MemorySpace.VMEM)
    return pl.pallas_call(
        coincident_kernel,
        out_shape=jax.ShapeDtypeStruct((B, 2), jnp.float32),
        in_specs=[vmem, vmem, vmem, vmem, vmem],   # whole arrays resident in VMEM
        out_specs=vmem,
    )(x_bf16, w1_bf16, b1_cat, w2_delta, b2_delta)


def coincident_network_ref(inputs, w1, b1, w2, b2):
    """Pure-JAX (f32) reference reproducing the PyTorch forward pass."""
    B, num_det, L = inputs.shape
    p1s = []
    for d in range(num_det):
        xd = inputs[:, d, :]                                   # split(dim=1) + flatten
        h = jnp.maximum(xd @ w1[d] + b1[d], 0.0)
        z = h @ w2[d] + b2[d]
        p = jax.nn.softmax(z, axis=1)
        p1s.append(p[:, 1:])                                   # [:, 1:]
    prod = p1s[0]
    for p1 in p1s[1:]:
        prod = prod * p1                                       # tensor_product
    return jnp.concatenate([jnp.ones_like(prod) - prod, prod], axis=1)


if __name__ == "__main__":
    B, NUM_DET, L, H = 8, 2, 128, 32

    key = jax.random.PRNGKey(0)
    k_x, k_w1, k_b1, k_w2, k_b2 = jax.random.split(key, 5)

    inputs = jax.random.normal(k_x, (B, NUM_DET, L), dtype=jnp.float32)
    w1 = 0.1 * jax.random.normal(k_w1, (NUM_DET, L, H), dtype=jnp.float32)
    b1 = 0.1 * jax.random.normal(k_b1, (NUM_DET, H), dtype=jnp.float32)
    w2 = 0.1 * jax.random.normal(k_w2, (NUM_DET, H, 2), dtype=jnp.float32)
    b2 = 0.1 * jax.random.normal(k_b2, (NUM_DET, 2), dtype=jnp.float32)

    out = jax.block_until_ready(coincident_network(inputs, w1, b1, w2, b2))
    ref = jax.block_until_ready(coincident_network_ref(inputs, w1, b1, w2, b2))
    np.testing.assert_allclose(np.asarray(out), np.asarray(ref), atol=1e-2, rtol=1e-2)

    print("KERNEL_OK")
</pallas_src>

<mosaic_0001>
module attributes {stable_mosaic.version = 11 : i64} {
  func.func @coincident_kernel(%arg0: memref<8x256xbf16, #tpu.memory_space<vmem>>, %arg1: memref<256x64xbf16, #tpu.memory_space<vmem>>, %arg2: memref<1x64xf32, #tpu.memory_space<vmem>>, %arg3: memref<2x1x32xf32, #tpu.memory_space<vmem>>, %arg4: memref<2x1x1xf32, #tpu.memory_space<vmem>>, %arg5: memref<8x2xf32, #tpu.memory_space<vmem>>) attributes {dimension_semantics = [], scalar_prefetch = 0 : i64, scratch_operands = 0 : i64, tpu.core_type = #tpu.core_type<tc>} {
    %c0 = arith.constant 0 : index
    %c0_0 = arith.constant 0 : index
    %0 = vector.load %arg0[%c0, %c0_0] : memref<8x256xbf16, #tpu.memory_space<vmem>>, vector<8x256xbf16>
    %c0_1 = arith.constant 0 : index
    %c0_2 = arith.constant 0 : index
    %1 = vector.load %arg1[%c0_1, %c0_2] : memref<256x64xbf16, #tpu.memory_space<vmem>>, vector<256x64xbf16>
    %cst = arith.constant dense<0.000000e+00> : vector<8x64xf32>
    %2 = tpu.matmul %0, %1, %cst {dimension_numbers = #tpu.dot_dimension_numbers<[1], [0], [0], [1], [0, 0, 1, 1], [], []>} : vector<8x256xbf16>, vector<256x64xbf16>, vector<8x64xf32> -> vector<8x64xf32>
    %c0_3 = arith.constant 0 : index
    %c0_4 = arith.constant 0 : index
    %3 = vector.load %arg2[%c0_3, %c0_4] : memref<1x64xf32, #tpu.memory_space<vmem>>, vector<1x64xf32>
    %4 = vector.broadcast %3 : vector<1x64xf32> to vector<8x64xf32>
    %5 = arith.addf %2, %4 : vector<8x64xf32>
    %cst_5 = arith.constant 0.000000e+00 : f32
    %6 = vector.broadcast %cst_5 : f32 to vector<8x64xf32>
    %7 = arith.maximumf %5, %6 : vector<8x64xf32>
    %8 = vector.extract_strided_slice %7 {offsets = [0, 0], sizes = [8, 32], strides = [1, 1]} : vector<8x64xf32> to vector<8x32xf32>
    %c0_6 = arith.constant 0 : index
    %c0_7 = arith.constant 0 : index
    %c0_8 = arith.constant 0 : index
    %9 = vector.load %arg3[%c0_6, %c0_7, %c0_8] : memref<2x1x32xf32, #tpu.memory_space<vmem>>, vector<1x1x32xf32>
    %10 = vector.shape_cast %9 : vector<1x1x32xf32> to vector<1x32xf32>
    %11 = vector.broadcast %10 : vector<1x32xf32> to vector<8x32xf32>
    %12 = arith.mulf %8, %11 : vector<8x32xf32>
    %cst_9 = arith.constant dense<0.000000e+00> : vector<8xf32>
    %13 = vector.multi_reduction <add>, %12, %cst_9 [1] : vector<8x32xf32> to vector<8xf32>
    %14 = vector.shape_cast %13 : vector<8xf32> to vector<8x1xf32>
    %c0_10 = arith.constant 0 : index
    %c0_11 = arith.constant 0 : index
    %c0_12 = arith.constant 0 : index
    %15 = vector.load %arg4[%c0_10, %c0_11, %c0_12] : memref<2x1x1xf32, #tpu.memory_space<vmem>>, vector<1x1x1xf32>
    %16 = vector.shape_cast %15 : vector<1x1x1xf32> to vector<1x1xf32>
    %17 = vector.broadcast %16 : vector<1x1xf32> to vector<8x1xf32>
    %18 = arith.addf %14, %17 : vector<8x1xf32>
    %cst_13 = arith.constant 0.000000e+00 : f32
    %19 = vector.broadcast %cst_13 : f32 to vector<8x1xf32>
    %20 = arith.subf %19, %18 : vector<8x1xf32>
    %21 = math.exp %20 : vector<8x1xf32>
    %cst_14 = arith.constant 1.000000e+00 : f32
    %22 = vector.broadcast %cst_14 : f32 to vector<8x1xf32>
    %23 = arith.addf %22, %21 : vector<8x1xf32>
    %24 = tpu.reciprocal %23 {approx = true} : vector<8x1xf32> -> vector<8x1xf32>
    %25 = vector.extract_strided_slice %7 {offsets = [0, 32], sizes = [8, 32], strides = [1, 1]} : vector<8x64xf32> to vector<8x32xf32>
    %c1 = arith.constant 1 : index
    %c0_15 = arith.constant 0 : index
    %c0_16 = arith.constant 0 : index
    %26 = vector.load %arg3[%c1, %c0_15, %c0_16] : memref<2x1x32xf32, #tpu.memory_space<vmem>>, vector<1x1x32xf32>
    %27 = vector.shape_cast %26 : vector<1x1x32xf32> to vector<1x32xf32>
    %28 = vector.broadcast %27 : vector<1x32xf32> to vector<8x32xf32>
    %29 = arith.mulf %25, %28 : vector<8x32xf32>
    %cst_17 = arith.constant dense<0.000000e+00> : vector<8xf32>
    %30 = vector.multi_reduction <add>, %29, %cst_17 [1] : vector<8x32xf32> to vector<8xf32>
    %31 = vector.shape_cast %30 : vector<8xf32> to vector<8x1xf32>
    %c1_18 = arith.constant 1 : index
    %c0_19 = arith.constant 0 : index
    %c0_20 = arith.constant 0 : index
    %32 = vector.load %arg4[%c1_18, %c0_19, %c0_20] : memref<2x1x1xf32, #tpu.memory_space<vmem>>, vector<1x1x1xf32>
    %33 = vector.shape_cast %32 : vector<1x1x1xf32> to vector<1x1xf32>
    %34 = vector.broadcast %33 : vector<1x1xf32> to vector<8x1xf32>
    %35 = arith.addf %31, %34 : vector<8x1xf32>
    %cst_21 = arith.constant 0.000000e+00 : f32
    %36 = vector.broadcast %cst_21 : f32 to vector<8x1xf32>
    %37 = arith.subf %36, %35 : vector<8x1xf32>
    %38 = math.exp %37 : vector<8x1xf32>
    %cst_22 = arith.constant 1.000000e+00 : f32
    %39 = vector.broadcast %cst_22 : f32 to vector<8x1xf32>
    %40 = arith.addf %39, %38 : vector<8x1xf32>
    %41 = tpu.reciprocal %40 {approx = true} : vector<8x1xf32> -> vector<8x1xf32>
    %42 = arith.mulf %24, %41 : vector<8x1xf32>
    %cst_23 = arith.constant 1.000000e+00 : f32
    %43 = vector.broadcast %cst_23 : f32 to vector<8x1xf32>
    %44 = arith.subf %43, %42 : vector<8x1xf32>
    %45 = tpu.concatenate %44, %42 in 1 : vector<8x1xf32>, vector<8x1xf32> -> vector<8x2xf32>
    %c0_24 = arith.constant 0 : index
    %c0_25 = arith.constant 0 : index
    %46 = vector.load %arg5[%c0_24, %c0_25] : memref<8x2xf32, #tpu.memory_space<vmem>>, vector<8x2xf32>
    tpu.vector_store %arg5[%c0_24, %c0_25], %45 {strides = array<i32>} : memref<8x2xf32, #tpu.memory_space<vmem>>, vector<8x2xf32>,
    return
  }
}

</mosaic_0001>

<bundles_post_ra>
// kernel: tpu_custom_call.1
= control target key start
LH: loop header
LB: loop body
LE: loop exit
PB: predicated region body
PF: predicated region fallthrough
CT: control target
= control target key end

     0   :  { %s344_s7 = smov 32   ;;  %vm192_vm0 = vcmask 261120   ;;  %s346_s10 = smov 1   ;;  %vm238_vm1 = vcmask 7168   ;;  %vm240_vm2 = vcmask 15360   ;;  %s446_s1 = inlined_call_operand.vmem [shape: bf16[256,64], index: 1, kind: input, shape index: {}]   ;;  %s447_s3 = inlined_call_operand.vmem [shape: f32[2,1,32], index: 3, kind: input, shape index: {}]   ;;  %s448_s2 = inlined_call_operand.vmem [shape: f32[1,64], index: 2, kind: input, shape index: {}]   ;;  %s449_s0 = inlined_call_operand.vmem [shape: bf16[8,256], index: 0, kind: input, shape index: {}]   ;;  %s450_s4 = inlined_call_operand.vmem [shape: f32[2,1,1], index: 4, kind: input, shape index: {}]   ;;  %s451_s5 = inlined_call_operand.vmem [shape: f32[8,2], index: 5, kind: output, shape index: {}]  }
   0x1   :  { %v319_v0 = vld [vmem:[%s446_s1 + $0x38] sm:$0xff]  ;;  %v318_v2 = vld [vmem:[%s446_s1 + $0x30] sm:$0xff]  ;;  %v317_v4 = vld [vmem:[%s446_s1 + $0x28] sm:$0xff] }
   0x2   :  { %v327_v1 = vld [vmem:[%s446_s1 + $0x78] sm:$0xff]  ;;  %160 = vmatpush.bf16.msra.mxu0 %v319_v0  ;;  %v326_v3 = vld [vmem:[%s446_s1 + $0x70] sm:$0xff]  ;;  %v325_v5 = vld [vmem:[%s446_s1 + $0x68] sm:$0xff] }
   0x3   :  { %173 = vmatpush.bf16.msra.mxu1 %v327_v1  ;;  %v331_v6 = vld [vmem:[%s447_s3 + $0x1] ss:$0 sm:$0xff]  ;;  %v315_v9 = vld [vmem:[%s446_s1 + $0x18] sm:$0xff]  ;;  %v314_v11 = vld [vmem:[%s446_s1 + $0x10] sm:$0xff] }
   0x4   :  { %210 = vrot.lane.b32.xlu0 %v331_v6, %s344_s7  ;;  %v316_v7 = vld [vmem:[%s446_s1 + $0x20] sm:$0xff]  ;;  %v323_v10 = vld [vmem:[%s446_s1 + $0x58] sm:$0xff]  ;;  %v322_v12 = vld [vmem:[%s446_s1 + $0x50] sm:$0xff] }
   0x5   :  { %v324_v8 = vld [vmem:[%s446_s1 + $0x60] sm:$0xff]  ;;  %v313_v13 = vld [vmem:[%s446_s1 + $0x8] sm:$0xff] }
   0x6   :  { %161 = vmatpush.bf16.msra.mxu0 %v318_v2  ;;  %v321_v14 = vld [vmem:[%s446_s1 + $0x48] sm:$0xff]  ;;  %v20_v15 = vld [vmem:[%s449_s0] sm:$0xff] }
   0x7   :  { %174 = vmatpush.bf16.msra.mxu1 %v326_v3  ;;  %v58_v16 = vunpack.c.l.b16 %v20_v15  ;;  %v59_v17 = vunpack.c.h.b16 %v20_v15  ;;  %v312_v18 = vld [vmem:[%s446_s1] sm:$0xff] }
   0x8   :  { %v320_v19 = vld [vmem:[%s446_s1 + $0x40] sm:$0xff]  ;;  %s345_s1 = smov 96  }
   0x9   :  { %v60_v20 = vpack.c.b16 %v58_v16, %v58_v16  ;;  %v61_v21 = vpack.c.b16 %v59_v17, %v59_v17  ;;  %v332_v22 = vld [vmem:[%s448_s2] ss:$0 sm:$0xff]  ;;  %v335_v41 = vld [vmem:[%s450_s4 + $0x1] ss:$0 sm:$0xff] }
   0xa   :  { %162 = vmatpush.bf16.msra.mxu0 %v317_v4  ;;  %v333_v27 = vld [vmem:[%s447_s3] ss:$0 sm:$0xff] }
   0xb   :  { %175 = vmatpush.bf16.msra.mxu1 %v325_v5  ;;  %v334_v37 = vld [vmem:[%s450_s4] ss:$0 sm:$0xff] }
   0xe   :  { %163 = vmatpush.bf16.msra.mxu0 %v316_v7 }
   0xf   :  { %176 = vmatpush.bf16.msra.mxu1 %v324_v8 }
  0x12   :  { %164 = vmatpush.bf16.msra.mxu0 %v315_v9 }
  0x13   :  { %177 = vmatpush.bf16.msra.mxu1 %v323_v10 }
  0x16   :  { %165 = vmatpush.bf16.msra.mxu0 %v314_v11 }
  0x17   :  { %178 = vmatpush.bf16.msra.mxu1 %v322_v12 }
  0x1a   :  { %166 = vmatpush.bf16.msra.mxu0 %v313_v13 }
  0x1b   :  { %179 = vmatpush.bf16.msra.mxu1 %v321_v14 }
  0x1e   :  { %167 = vmatpush.bf16.msra.mxu0 %v312_v18 }
  0x1f   :  { %180 = vmatpush.bf16.msra.mxu1 %v320_v19 }
  0x21   :  { %168 = vmatmul.bf16.vlgmr.msra.gmra.mxu0 %v60_v20 }
  0x22   :  { %181 = vmatmul.bf16.vlgmr.msra.gmra.mxu1 %v61_v21 }
  0x76   :  { %v211_v28 = vpop.permute.xlu0 %210 }
  0x9e   :  { %v169_v23 = vpop.f32.mrf.mxu0 }
  0x9f   :  { %v182_v24 = vpop.f32.mrf.mxu1  ;;  %v170_v25 = vadd.f32 %v332_v22, %v169_v23 }
  0xa1   :  { %v183_v26 = vadd.f32 %v182_v24, %v170_v25 }
  0xa3   :  { %v186_v29 = vmax.f32 %v183_v26, 0.0 }
  0xa5   :  { %v213_v30 = vmul.f32 %v211_v28, %v186_v29  ;;  %v191_v31 = vmul.f32 %v333_v27, %v186_v29 }
  0xa6   :  { %v171_v32 = vpop.f32.mrf.mxu0 }
  0xa7   :  { %v184_v33 = vpop.f32.mrf.mxu1  ;;  %215 = vrot.lane.b32.xlu0 %v213_v30, %s345_s1  ;;  %v193_v34 = vsel %vm192_vm0, %v191_v31, 0.0 }
  0xa8   :  { %194 = vadd.xlane.f32.xlu1 %v193_v34 }
 0x119   :  { %v216_v35 = vpop.permute.xlu0 %215 }
 0x11a   :  { %v218_v36 = vsel %vm192_vm0, %v216_v35, 0.0 }
 0x11b   :  { %219 = vadd.xlane.f32.xlu1 %v218_v36  ;;  %v195_v38 = vpop.xlane.xlu1 %194 }
 0x11c   :  { %v200_v39 = vadd.f32 %v334_v37, %v195_v38 }
 0x11e   :  { %v201_v40 = vsub.f32 0.0, %v200_v39 }
 0x120   :  { %v202_v42 = vmul.f32 1.442695, %v201_v40 }
 0x122   :  { %336 = vpow2.f32 %v202_v42 }
 0x128   :  { %v337_v47 = vpop.eup %336 }
 0x129   :  { %v204_v48 = vadd.f32 1.0, %v337_v47 }
 0x18e   :  { %v220_v43 = vpop.xlane.xlu1 %219 }
 0x18f   :  { %v226_v44 = vadd.f32 %v335_v41, %v220_v43 }
 0x191   :  { %v227_v45 = vsub.f32 0.0, %v226_v44 }
 0x193   :  { %v228_v46 = vmul.f32 1.442695, %v227_v45 }
 0x195   :  { %338 = vpow2.f32 %v228_v46 }
 0x196   :  { %340 = vrcp.f32 %v204_v48 }
 0x19b   :  { %v339_v49 = vpop.eup %338 }
 0x19c   :  { %v230_v50 = vadd.f32 1.0, %v339_v49  ;;  %v341_v51 = vpop.eup %340 }
 0x19e   :  { %342 = vrcp.f32 %v230_v50 }
 0x1a4   :  { %v343_v52 = vpop.eup %342 }
 0x1a5   :  { %v232_v53 = vmul.f32 %v343_v52, %v341_v51 }
 0x1a7   :  { %235 = vrot.lane.b32.xlu2 %v232_v53, %s346_s10  ;;  %v233_v54 = vsub.f32 1.0, %v232_v53 }
 0x201   :  { %v236_v55 = vpop.permute.xlu2 %235 }
 0x202   :  { %v239_v56 = vsel %vm238_vm1, %v233_v54, %v236_v55 }
 0x203   :  { %241 = vst.msk [vmem:[%s451_s5] sm:$0xff] %vm240_vm2, %v239_v56 }

</bundles_post_ra>
